<compile_context>
chip_gen: v7x
topology: tpu7x:2x2x1
jax: 0.10.0
libtpu: 0.0.40
codegen_flags: <defaults>
</compile_context>

<pallas_src>
import functools

import jax
import jax.numpy as jnp
from jax.experimental import pallas as pl
from jax.experimental.pallas import tpu as pltpu

LANE = 128
_VMEM = pl.BlockSpec(memory_space=pltpu.MemorySpace.VMEM)


def _round_up(x, m):
    return (x + m - 1) // m * m


# ----------------------------------------------------------------------------
# Fused Pallas kernel: the entire forward pass in one VMEM-resident block.
# ----------------------------------------------------------------------------
def _fused_forward_kernel(*refs, n_enc, n_gnn, n_dec):
    """refs = (a_norm, pool_mat, x, w0, b0, ..., wL-1, bL-1, out).

    All feature dims are zero-padded to LANE=128 so every intermediate is
    lane-dense.  Matmul inputs are bf16 (MXU), accumulation + bias + ReLU in
    f32 (safe on v5e which lacks a bf16 VPU path).
    """
    a_ref, p_ref, x_ref = refs[0], refs[1], refs[2]
    o_ref = refs[-1]
    wbs = refs[3:-1]
    ws, bs = wbs[0::2], wbs[1::2]

    def dense(h, w_ref, b_ref, relu):
        y = jnp.dot(h.astype(jnp.bfloat16), w_ref[...],
                    preferred_element_type=jnp.float32)
        y = y + b_ref[...]
        return jnp.maximum(y, 0.0) if relu else y

    idx = 0
    h = x_ref[...]                                   # [N_pad, 128] f32

    # input_encoder: ReLU after every Linear (output_activation=ReLU).
    for _ in range(n_enc):
        h = dense(h, ws[idx], bs[idx], relu=True)
        idx += 1

    # GraphFeatureEncoder: GCNConv+ReLU for all but the last, last has no act.
    # A_norm is read from VMEM once and reused across all GCN layers.
    a = a_ref[...]                                   # [N_pad, N_pad] bf16
    for i in range(n_gnn):
        hw = jnp.dot(h.astype(jnp.bfloat16), ws[idx][...],
                     preferred_element_type=jnp.float32)
        y = jnp.dot(a, hw.astype(jnp.bfloat16),
                    preferred_element_type=jnp.float32)
        y = y + bs[idx][...]
        h = jnp.maximum(y, 0.0) if i < n_gnn - 1 else y
        idx += 1

    # scatter_mean as matmul with the pre-normalized pooling matrix.
    h = jnp.dot(p_ref[...], h.astype(jnp.bfloat16),
                preferred_element_type=jnp.float32)  # [B_pad, 128]

    # final_projection: ReLU between layers, identity on the output layer.
    for i in range(n_dec):
        h = dense(h, ws[idx], bs[idx], relu=(i < n_dec - 1))
        idx += 1

    o_ref[...] = h.astype(o_ref.dtype)


def fused_forward(a_norm, pool_mat, x_pad, padded_layers, n_enc, n_gnn, n_dec):
    flat = []
    for w, b in padded_layers:
        flat.extend((w, b))
    b_pad = pool_mat.shape[0]
    kernel = functools.partial(_fused_forward_kernel,
                               n_enc=n_enc, n_gnn=n_gnn, n_dec=n_dec)
    # TODO(synk): for large meshes (N >~ 2-3k on v7x) switch to a grid over N
    # with (tn, tk) tiles of A_norm + an f32 accumulator scratch instead of
    # this single whole-array VMEM block.
    return pl.pallas_call(
        kernel,
        out_shape=jax.ShapeDtypeStruct((b_pad, LANE), jnp.float32),
        in_specs=[_VMEM] * (3 + len(flat)),
        out_specs=_VMEM,
        compiler_params=pltpu.CompilerParams(
            vmem_limit_bytes=32 * 1024 * 1024),
    )(a_norm, pool_mat, x_pad, *flat)


# ----------------------------------------------------------------------------
# Plain-JAX glue: static graph structure (computed ONCE per mesh/batch).
# ----------------------------------------------------------------------------
def gcn_norm_adjacency(edge_index, num_nodes):
    """Dense GCN-normalized adjacency: D^-1/2 (A + I) D^-1/2."""
    src, dst = edge_index[0], edge_index[1]
    # TODO(synk): duplicate edges are deduplicated by .set(); PyG GCNConv
    # would scatter-add them (only matters for multigraph inputs).
    a = jnp.zeros((num_nodes, num_nodes), jnp.float32).at[dst, src].set(1.0)
    a = a + jnp.eye(num_nodes, dtype=jnp.float32)   # self loops
    deg = jnp.sum(a, axis=1)
    d_inv_sqrt = 1.0 / jnp.sqrt(jnp.maximum(deg, 1.0))
    return a * d_inv_sqrt[:, None] * d_inv_sqrt[None, :]


def mean_pool_matrix(batch, num_graphs):
    """P[b, i] = 1/|graph b| if batch[i]==b else 0  (scatter_mean as matmul)."""
    onehot = jax.nn.one_hot(batch, num_graphs, dtype=jnp.float32).T  # [B, N]
    counts = jnp.sum(onehot, axis=1, keepdims=True)
    return onehot / jnp.maximum(counts, 1.0)


def precompute_graph(edge_index, batch, num_nodes, num_graphs):
    """Static per-mesh structure; call once, reuse across forward steps."""
    n_pad = _round_up(num_nodes, 8)
    b_pad = _round_up(num_graphs, 8)
    a = gcn_norm_adjacency(edge_index, num_nodes)
    a_pad = jnp.zeros((n_pad, n_pad), jnp.float32)
    a_pad = a_pad.at[:num_nodes, :num_nodes].set(a)
    p = mean_pool_matrix(batch, num_graphs)
    p_pad = jnp.zeros((b_pad, n_pad), jnp.float32)
    p_pad = p_pad.at[:num_graphs, :num_nodes].set(p)
    # bf16 storage halves DMA bytes of the largest operand (A_norm).
    return a_pad.astype(jnp.bfloat16), p_pad.astype(jnp.bfloat16)


# ----------------------------------------------------------------------------
# Parameters (torch nn.Linear default init), padded once to lane width.
# ----------------------------------------------------------------------------
def init_linear(key, fan_in, fan_out):
    kw, kb = jax.random.split(key)
    bound = 1.0 / jnp.sqrt(jnp.float32(fan_in))
    w = jax.random.uniform(kw, (fan_in, fan_out), jnp.float32, -bound, bound)
    b = jax.random.uniform(kb, (1, fan_out), jnp.float32, -bound, bound)
    return w, b


def init_params(key, in_features, encoder_channels, conv_channels,
                decoder_channels, num_classes):
    enc_dims = [in_features] + encoder_channels
    gnn_dims = [enc_dims[-1]] + conv_channels
    dec_dims = [conv_channels[-1]] + decoder_channels + [num_classes]
    params = {"encoder": [], "gnn": [], "decoder": []}
    for dims, name in ((enc_dims, "encoder"), (gnn_dims, "gnn"),
                       (dec_dims, "decoder")):
        for i in range(len(dims) - 1):
            key, sub = jax.random.split(key)
            params[name].append(init_linear(sub, dims[i], dims[i + 1]))
    return params


def pad_params(params):
    """Zero-pad every layer to [128,128] bf16 weight + [1,128] f32 bias so all
    activations stay lane-dense.  Padded cols stay exactly zero end-to-end."""
    padded = []
    for name in ("encoder", "gnn", "decoder"):
        for w, b in params[name]:
            wp = jnp.zeros((LANE, LANE), jnp.float32)
            wp = wp.at[:w.shape[0], :w.shape[1]].set(w)
            bp = jnp.zeros((1, LANE), jnp.float32).at[:, :b.shape[1]].set(b)
            padded.append((wp.astype(jnp.bfloat16), bp))
    counts = (len(params["encoder"]), len(params["gnn"]),
              len(params["decoder"]))
    return padded, counts


# ----------------------------------------------------------------------------
# Forward pass (matches MeshProcessingNetwork.forward in eval mode).
# ----------------------------------------------------------------------------
def mesh_processing_network_forward(padded_layers, counts, x, a_norm, pool_mat,
                                    num_graphs, num_classes,
                                    aggregation="mean"):
    assert aggregation == "mean"
    # TODO(synk): aggregation == 'max' (scatter_max) path not implemented.
    n, f = x.shape
    n_pad = a_norm.shape[0]
    x_pad = jnp.zeros((n_pad, LANE), jnp.float32).at[:n, :f].set(x)
    n_enc, n_gnn, n_dec = counts
    out = fused_forward(a_norm, pool_mat, x_pad, padded_layers,
                        n_enc, n_gnn, n_dec)
    out = out[:num_graphs, :num_classes]
    if num_classes == 1:
        out = jnp.squeeze(out, axis=1)
    return out


# Pure-JAX f32 reference (for validating the bf16 MXU path).
def reference_forward(params, x, edge_index, batch, num_graphs, num_classes):
    a = gcn_norm_adjacency(edge_index, x.shape[0])
    h = x
    for w, b in params["encoder"]:
        h = jnp.maximum(h @ w + b, 0.0)
    gnn = params["gnn"]
    for i, (w, b) in enumerate(gnn):
        y = a @ (h @ w) + b
        h = jnp.maximum(y, 0.0) if i < len(gnn) - 1 else y
    h = mean_pool_matrix(batch, num_graphs) @ h
    dec = params["decoder"]
    for i, (w, b) in enumerate(dec):
        y = h @ w + b
        h = jnp.maximum(y, 0.0) if i < len(dec) - 1 else y
    if num_classes == 1:
        h = jnp.squeeze(h, axis=1)
    return h


# ----------------------------------------------------------------------------
# Example run.
# ----------------------------------------------------------------------------
if __name__ == "__main__":
    in_features = 6
    encoder_channels = [32, 64]
    conv_channels = [64, 64, 64]
    decoder_channels = [32]
    num_classes = 4
    nodes_per_graph = 32
    num_graphs = 2
    num_nodes = nodes_per_graph * num_graphs

    key = jax.random.PRNGKey(0)
    key, k_x, k_p = jax.random.split(key, 3)

    # Node features.
    x = jax.random.normal(k_x, (num_nodes, in_features), jnp.float32)

    # Bidirectional ring graph per mesh (deterministic edge_index).
    src, dst = [], []
    for g in range(num_graphs):
        off = g * nodes_per_graph
        for i in range(nodes_per_graph):
            j = (i + 1) % nodes_per_graph
            src += [off + i, off + j]
            dst += [off + j, off + i]
    edge_index = jnp.array([src, dst], dtype=jnp.int32)   # [2, E]

    # Graph assignment per node.
    batch = jnp.repeat(jnp.arange(num_graphs, dtype=jnp.int32),
                       nodes_per_graph)                    # [N]

    params = init_params(k_p, in_features, encoder_channels, conv_channels,
                         decoder_channels, num_classes)

    # One-time precomputation (static graph topology / batch assignment).
    padded_layers, counts = pad_params(params)
    a_norm, pool_mat = precompute_graph(edge_index, batch, num_nodes,
                                        num_graphs)

    out = mesh_processing_network_forward(
        padded_layers, counts, x, a_norm, pool_mat, num_graphs, num_classes,
        aggregation="mean")
    out = jax.block_until_ready(out)

    assert out.shape == (num_graphs, num_classes), out.shape
    assert jnp.all(jnp.isfinite(out))

    # Validate bf16-MXU fused kernel against the pure-f32 reference.
    ref = reference_forward(params, x, edge_index, batch, num_graphs,
                            num_classes)
    assert jnp.allclose(out, ref, rtol=5e-2, atol=5e-2)

    print("KERNEL_OK")
</pallas_src>

<mosaic_0001>
module attributes {stable_mosaic.version = 11 : i64} {
  func.func @_fused_forward_kernel(%arg0: memref<64x64xbf16, #tpu.memory_space<vmem>>, %arg1: memref<8x64xbf16, #tpu.memory_space<vmem>>, %arg2: memref<64x128xf32, #tpu.memory_space<vmem>>, %arg3: memref<128x128xbf16, #tpu.memory_space<vmem>>, %arg4: memref<1x128xf32, #tpu.memory_space<vmem>>, %arg5: memref<128x128xbf16, #tpu.memory_space<vmem>>, %arg6: memref<1x128xf32, #tpu.memory_space<vmem>>, %arg7: memref<128x128xbf16, #tpu.memory_space<vmem>>, %arg8: memref<1x128xf32, #tpu.memory_space<vmem>>, %arg9: memref<128x128xbf16, #tpu.memory_space<vmem>>, %arg10: memref<1x128xf32, #tpu.memory_space<vmem>>, %arg11: memref<128x128xbf16, #tpu.memory_space<vmem>>, %arg12: memref<1x128xf32, #tpu.memory_space<vmem>>, %arg13: memref<128x128xbf16, #tpu.memory_space<vmem>>, %arg14: memref<1x128xf32, #tpu.memory_space<vmem>>, %arg15: memref<128x128xbf16, #tpu.memory_space<vmem>>, %arg16: memref<1x128xf32, #tpu.memory_space<vmem>>, %arg17: memref<8x128xf32, #tpu.memory_space<vmem>>) attributes {dimension_semantics = [], scalar_prefetch = 0 : i64, scratch_operands = 0 : i64, tpu.core_type = #tpu.core_type<tc>} {
    %c0 = arith.constant 0 : index
    %c0_0 = arith.constant 0 : index
    %0 = vector.load %arg2[%c0, %c0_0] : memref<64x128xf32, #tpu.memory_space<vmem>>, vector<64x128xf32>
    %1 = arith.truncf %0 : vector<64x128xf32> to vector<64x128xbf16>
    %c0_1 = arith.constant 0 : index
    %c0_2 = arith.constant 0 : index
    %2 = vector.load %arg3[%c0_1, %c0_2] : memref<128x128xbf16, #tpu.memory_space<vmem>>, vector<128x128xbf16>
    %cst = arith.constant dense<0.000000e+00> : vector<64x128xf32>
    %3 = tpu.matmul %1, %2, %cst {dimension_numbers = #tpu.dot_dimension_numbers<[1], [0], [0], [1], [0, 0, 1, 1], [], []>} : vector<64x128xbf16>, vector<128x128xbf16>, vector<64x128xf32> -> vector<64x128xf32>
    %c0_3 = arith.constant 0 : index
    %c0_4 = arith.constant 0 : index
    %4 = vector.load %arg4[%c0_3, %c0_4] : memref<1x128xf32, #tpu.memory_space<vmem>>, vector<1x128xf32>
    %5 = vector.broadcast %4 : vector<1x128xf32> to vector<64x128xf32>
    %6 = arith.addf %3, %5 : vector<64x128xf32>
    %cst_5 = arith.constant 0.000000e+00 : f32
    %7 = vector.broadcast %cst_5 : f32 to vector<64x128xf32>
    %8 = arith.maximumf %6, %7 : vector<64x128xf32>
    %9 = arith.truncf %8 : vector<64x128xf32> to vector<64x128xbf16>
    %c0_6 = arith.constant 0 : index
    %c0_7 = arith.constant 0 : index
    %10 = vector.load %arg5[%c0_6, %c0_7] : memref<128x128xbf16, #tpu.memory_space<vmem>>, vector<128x128xbf16>
    %cst_8 = arith.constant dense<0.000000e+00> : vector<64x128xf32>
    %11 = tpu.matmul %9, %10, %cst_8 {dimension_numbers = #tpu.dot_dimension_numbers<[1], [0], [0], [1], [0, 0, 1, 1], [], []>} : vector<64x128xbf16>, vector<128x128xbf16>, vector<64x128xf32> -> vector<64x128xf32>
    %c0_9 = arith.constant 0 : index
    %c0_10 = arith.constant 0 : index
    %12 = vector.load %arg6[%c0_9, %c0_10] : memref<1x128xf32, #tpu.memory_space<vmem>>, vector<1x128xf32>
    %13 = vector.broadcast %12 : vector<1x128xf32> to vector<64x128xf32>
    %14 = arith.addf %11, %13 : vector<64x128xf32>
    %cst_11 = arith.constant 0.000000e+00 : f32
    %15 = vector.broadcast %cst_11 : f32 to vector<64x128xf32>
    %16 = arith.maximumf %14, %15 : vector<64x128xf32>
    %c0_12 = arith.constant 0 : index
    %c0_13 = arith.constant 0 : index
    %17 = vector.load %arg0[%c0_12, %c0_13] : memref<64x64xbf16, #tpu.memory_space<vmem>>, vector<64x64xbf16>
    %18 = arith.truncf %16 : vector<64x128xf32> to vector<64x128xbf16>
    %c0_14 = arith.constant 0 : index
    %c0_15 = arith.constant 0 : index
    %19 = vector.load %arg7[%c0_14, %c0_15] : memref<128x128xbf16, #tpu.memory_space<vmem>>, vector<128x128xbf16>
    %cst_16 = arith.constant dense<0.000000e+00> : vector<64x128xf32>
    %20 = tpu.matmul %18, %19, %cst_16 {dimension_numbers = #tpu.dot_dimension_numbers<[1], [0], [0], [1], [0, 0, 1, 1], [], []>} : vector<64x128xbf16>, vector<128x128xbf16>, vector<64x128xf32> -> vector<64x128xf32>
    %21 = arith.truncf %20 : vector<64x128xf32> to vector<64x128xbf16>
    %cst_17 = arith.constant dense<0.000000e+00> : vector<64x128xf32>
    %22 = tpu.matmul %17, %21, %cst_17 {dimension_numbers = #tpu.dot_dimension_numbers<[1], [0], [0], [1], [0, 0, 1, 1], [], []>} : vector<64x64xbf16>, vector<64x128xbf16>, vector<64x128xf32> -> vector<64x128xf32>
    %c0_18 = arith.constant 0 : index
    %c0_19 = arith.constant 0 : index
    %23 = vector.load %arg8[%c0_18, %c0_19] : memref<1x128xf32, #tpu.memory_space<vmem>>, vector<1x128xf32>
    %24 = vector.broadcast %23 : vector<1x128xf32> to vector<64x128xf32>
    %25 = arith.addf %22, %24 : vector<64x128xf32>
    %cst_20 = arith.constant 0.000000e+00 : f32
    %26 = vector.broadcast %cst_20 : f32 to vector<64x128xf32>
    %27 = arith.maximumf %25, %26 : vector<64x128xf32>
    %28 = arith.truncf %27 : vector<64x128xf32> to vector<64x128xbf16>
    %c0_21 = arith.constant 0 : index
    %c0_22 = arith.constant 0 : index
    %29 = vector.load %arg9[%c0_21, %c0_22] : memref<128x128xbf16, #tpu.memory_space<vmem>>, vector<128x128xbf16>
    %cst_23 = arith.constant dense<0.000000e+00> : vector<64x128xf32>
    %30 = tpu.matmul %28, %29, %cst_23 {dimension_numbers = #tpu.dot_dimension_numbers<[1], [0], [0], [1], [0, 0, 1, 1], [], []>} : vector<64x128xbf16>, vector<128x128xbf16>, vector<64x128xf32> -> vector<64x128xf32>
    %31 = arith.truncf %30 : vector<64x128xf32> to vector<64x128xbf16>
    %cst_24 = arith.constant dense<0.000000e+00> : vector<64x128xf32>
    %32 = tpu.matmul %17, %31, %cst_24 {dimension_numbers = #tpu.dot_dimension_numbers<[1], [0], [0], [1], [0, 0, 1, 1], [], []>} : vector<64x64xbf16>, vector<64x128xbf16>, vector<64x128xf32> -> vector<64x128xf32>
    %c0_25 = arith.constant 0 : index
    %c0_26 = arith.constant 0 : index
    %33 = vector.load %arg10[%c0_25, %c0_26] : memref<1x128xf32, #tpu.memory_space<vmem>>, vector<1x128xf32>
    %34 = vector.broadcast %33 : vector<1x128xf32> to vector<64x128xf32>
    %35 = arith.addf %32, %34 : vector<64x128xf32>
    %cst_27 = arith.constant 0.000000e+00 : f32
    %36 = vector.broadcast %cst_27 : f32 to vector<64x128xf32>
    %37 = arith.maximumf %35, %36 : vector<64x128xf32>
    %38 = arith.truncf %37 : vector<64x128xf32> to vector<64x128xbf16>
    %c0_28 = arith.constant 0 : index
    %c0_29 = arith.constant 0 : index
    %39 = vector.load %arg11[%c0_28, %c0_29] : memref<128x128xbf16, #tpu.memory_space<vmem>>, vector<128x128xbf16>
    %cst_30 = arith.constant dense<0.000000e+00> : vector<64x128xf32>
    %40 = tpu.matmul %38, %39, %cst_30 {dimension_numbers = #tpu.dot_dimension_numbers<[1], [0], [0], [1], [0, 0, 1, 1], [], []>} : vector<64x128xbf16>, vector<128x128xbf16>, vector<64x128xf32> -> vector<64x128xf32>
    %41 = arith.truncf %40 : vector<64x128xf32> to vector<64x128xbf16>
    %cst_31 = arith.constant dense<0.000000e+00> : vector<64x128xf32>
    %42 = tpu.matmul %17, %41, %cst_31 {dimension_numbers = #tpu.dot_dimension_numbers<[1], [0], [0], [1], [0, 0, 1, 1], [], []>} : vector<64x64xbf16>, vector<64x128xbf16>, vector<64x128xf32> -> vector<64x128xf32>
    %c0_32 = arith.constant 0 : index
    %c0_33 = arith.constant 0 : index
    %43 = vector.load %arg12[%c0_32, %c0_33] : memref<1x128xf32, #tpu.memory_space<vmem>>, vector<1x128xf32>
    %44 = vector.broadcast %43 : vector<1x128xf32> to vector<64x128xf32>
    %45 = arith.addf %42, %44 : vector<64x128xf32>
    %c0_34 = arith.constant 0 : index
    %c0_35 = arith.constant 0 : index
    %46 = vector.load %arg1[%c0_34, %c0_35] : memref<8x64xbf16, #tpu.memory_space<vmem>>, vector<8x64xbf16>
    %47 = arith.truncf %45 : vector<64x128xf32> to vector<64x128xbf16>
    %cst_36 = arith.constant dense<0.000000e+00> : vector<8x128xf32>
    %48 = tpu.matmul %46, %47, %cst_36 {dimension_numbers = #tpu.dot_dimension_numbers<[1], [0], [0], [1], [0, 0, 1, 1], [], []>} : vector<8x64xbf16>, vector<64x128xbf16>, vector<8x128xf32> -> vector<8x128xf32>
    %49 = arith.truncf %48 : vector<8x128xf32> to vector<8x128xbf16>
    %c0_37 = arith.constant 0 : index
    %c0_38 = arith.constant 0 : index
    %50 = vector.load %arg13[%c0_37, %c0_38] : memref<128x128xbf16, #tpu.memory_space<vmem>>, vector<128x128xbf16>
    %cst_39 = arith.constant dense<0.000000e+00> : vector<8x128xf32>
    %51 = tpu.matmul %49, %50, %cst_39 {dimension_numbers = #tpu.dot_dimension_numbers<[1], [0], [0], [1], [0, 0, 1, 1], [], []>} : vector<8x128xbf16>, vector<128x128xbf16>, vector<8x128xf32> -> vector<8x128xf32>
    %c0_40 = arith.constant 0 : index
    %c0_41 = arith.constant 0 : index
    %52 = vector.load %arg14[%c0_40, %c0_41] : memref<1x128xf32, #tpu.memory_space<vmem>>, vector<1x128xf32>
    %53 = vector.broadcast %52 : vector<1x128xf32> to vector<8x128xf32>
    %54 = arith.addf %51, %53 : vector<8x128xf32>
    %cst_42 = arith.constant 0.000000e+00 : f32
    %55 = vector.broadcast %cst_42 : f32 to vector<8x128xf32>
    %56 = arith.maximumf %54, %55 : vector<8x128xf32>
    %57 = arith.truncf %56 : vector<8x128xf32> to vector<8x128xbf16>
    %c0_43 = arith.constant 0 : index
    %c0_44 = arith.constant 0 : index
    %58 = vector.load %arg15[%c0_43, %c0_44] : memref<128x128xbf16, #tpu.memory_space<vmem>>, vector<128x128xbf16>
    %cst_45 = arith.constant dense<0.000000e+00> : vector<8x128xf32>
    %59 = tpu.matmul %57, %58, %cst_45 {dimension_numbers = #tpu.dot_dimension_numbers<[1], [0], [0], [1], [0, 0, 1, 1], [], []>} : vector<8x128xbf16>, vector<128x128xbf16>, vector<8x128xf32> -> vector<8x128xf32>
    %c0_46 = arith.constant 0 : index
    %c0_47 = arith.constant 0 : index
    %60 = vector.load %arg16[%c0_46, %c0_47] : memref<1x128xf32, #tpu.memory_space<vmem>>, vector<1x128xf32>
    %61 = vector.broadcast %60 : vector<1x128xf32> to vector<8x128xf32>
    %62 = arith.addf %59, %61 : vector<8x128xf32>
    %c0_48 = arith.constant 0 : index
    %c0_49 = arith.constant 0 : index
    %63 = vector.load %arg17[%c0_48, %c0_49] : memref<8x128xf32, #tpu.memory_space<vmem>>, vector<8x128xf32>
    tpu.vector_store %arg17[%c0_48, %c0_49], %62 {strides = array<i32>} : memref<8x128xf32, #tpu.memory_space<vmem>>, vector<8x128xf32>,
    return
  }
}

</mosaic_0001>

<bundles_post_ra>
// kernel: tpu_custom_call.1
= control target key start
LH: loop header
LB: loop body
LE: loop exit
PB: predicated region body
PF: predicated region fallthrough
CT: control target
= control target key end

     0   :  { %s2571_s0 = inlined_call_operand.hbm [shape: bf16[64,64], index: 0, kind: input, shape index: {}]   ;;  %s2572_s1 = inlined_call_operand.hbm [shape: bf16[8,64], index: 1, kind: input, shape index: {}]   ;;  %s2573_s2 = inlined_call_operand.hbm [shape: f32[64,128], index: 2, kind: input, shape index: {}]   ;;  %s2574_s3 = inlined_call_operand.hbm [shape: bf16[128,128], index: 3, kind: input, shape index: {}]   ;;  %s2575_s4 = inlined_call_operand.vmem [shape: f32[1,128], index: 4, kind: input, shape index: {}]   ;;  %s2576_s5 = inlined_call_operand.hbm [shape: bf16[128,128], index: 5, kind: input, shape index: {}]   ;;  %s2577_s6 = inlined_call_operand.vmem [shape: f32[1,128], index: 6, kind: input, shape index: {}]   ;;  %s2578_s7 = inlined_call_operand.hbm [shape: bf16[128,128], index: 7, kind: input, shape index: {}]   ;;  %s2579_s8 = inlined_call_operand.vmem [shape: f32[1,128], index: 8, kind: input, shape index: {}]   ;;  %s2580_s9 = inlined_call_operand.hbm [shape: bf16[128,128], index: 9, kind: input, shape index: {}]   ;;  %s2581_s10 = inlined_call_operand.vmem [shape: f32[1,128], index: 10, kind: input, shape index: {}]   ;;  %s2582_s11 = inlined_call_operand.hbm [shape: bf16[128,128], index: 11, kind: input, shape index: {}]   ;;  %s2583_s12 = inlined_call_operand.vmem [shape: f32[1,128], index: 12, kind: input, shape index: {}]   ;;  %s2584_s13 = inlined_call_operand.hbm [shape: bf16[128,128], index: 13, kind: input, shape index: {}]   ;;  %s2585_s14 = inlined_call_operand.vmem [shape: f32[1,128], index: 14, kind: input, shape index: {}]   ;;  %s2586_s15 = inlined_call_operand.hbm [shape: bf16[128,128], index: 15, kind: input, shape index: {}]   ;;  %s2587_s16 = inlined_call_operand.vmem [shape: f32[1,128], index: 16, kind: input, shape index: {}]   ;;  %s2588_s17 = inlined_call_operand.hbm [shape: f32[8,128], index: 17, kind: output, shape index: {}]  }
   0x1   :  { %2591 = sst [smem:[#allocation27_spill]] %s2571_s0 }
   0x2   :  { %2592 = sst [smem:[#allocation28_spill]] %s2572_s1 }
   0x3   :  { %22 = vsyncpa [#allocation3], 0 }
   0x4   :  { %23 = vsyncpa [#allocation6], 0 }
   0x5   :  { %24 = vsyncpa [#allocation9], 0 }
   0x6   :  { %25 = vsyncpa [#allocation12], 0 }
   0x7   :  { %26 = vsyncpa [#allocation15], 0 }
   0x8   :  { %27 = vsyncpa [#allocation18], 0 }
   0x9   :  { %28 = vsyncpa [#allocation4], 0  ;;  %s2214_s24 = smov [#allocation5]   ;;  %s2593_s28 = sld [smem:[#allocation28_spill]] }
   0xa   :  { %s47_s25 = sshll.u32 %s2214_s24, 4  ;;  %s48_s25 = int_to_ptr.vmem [resolvable:$true] %s47_s25 }
   0xf   :  { %s1958_s29 = scalar_lea.hbm %s2593_s28, 64 }
  0x10   :  { %p1959_p0 = scmp.ne.s32.totalorder %s2593_s28, %s1958_s29  ;;  %p1962_p1 = scmp.lt.u32.totalorder %s1958_s29, %s2593_s28 }
  0x12   :  { %p1964_p2 = pnand %p1962_p1, %p1959_p0 }
  0x14   :  { %1967 = shalt.err (!%p1964_p2)
}
  0x15   :  { %s1968_s1 = scalar_lea.vmem %s48_s25, 64  ;;  %p1973_p4 = scmp.lt.s32.totalorder %s48_s25, %s48_s25 }
  0x16   :  { %p1969_p3 = scmp.ne.s32.totalorder %s48_s25, %s1968_s1  ;;  %p1974_p5 = scmp.lt.s32.totalorder %s1968_s1, %s1968_s1 }
  0x18   :  { %p1975_p6 = por %p1974_p5, %p1973_p4 }
  0x1a   :  { %p1976_p7 = pnand %p1975_p6, %p1969_p3 }
  0x1c   :  { %1979 = shalt.err (!%p1976_p7)
}
  0x1d   :  { %50 = dma.hbm_to_vmem [thread:$0]  %s2593_s28, 64, %s48_s25, [#allocation6]  }
  0x1e   :  { %s2215_s22 = smov [#allocation8]   ;;  %s2216_s24 = smov [#allocation11]  }
  0x1f   :  { %s68_s23 = sshll.u32 %s2215_s22, 4  ;;  %s96_s26 = sshll.u32 %s2216_s24, 4  ;;  %s69_s23 = int_to_ptr.vmem [resolvable:$true] %s68_s23  ;;  %s97_s26 = int_to_ptr.vmem [resolvable:$true] %s96_s26 }
  0x20   :  { %s1980_s0 = scalar_lea.hbm %s2574_s3, 1024 }
  0x21   :  { %p1981_p8 = scmp.ne.s32.totalorder %s2574_s3, %s1980_s0  ;;  %p1984_p9 = scmp.lt.u32.totalorder %s1980_s0, %s2574_s3 }
  0x23   :  { %p1986_p10 = pnand %p1984_p9, %p1981_p8 }
  0x25   :  { %1989 = shalt.err (!%p1986_p10)
}
  0x26   :  { %s1990_s25 = scalar_lea.vmem %s69_s23, 1024  ;;  %p1995_p12 = scmp.lt.s32.totalorder %s69_s23, %s69_s23 }
  0x27   :  { %p1991_p11 = scmp.ne.s32.totalorder %s69_s23, %s1990_s25  ;;  %p1996_p13 = scmp.lt.s32.totalorder %s1990_s25, %s1990_s25 }
  0x29   :  { %p1997_p0 = por %p1996_p13, %p1995_p12 }
  0x2b   :  { %p1998_p1 = pnand %p1997_p0, %p1991_p11 }
  0x2d   :  { %2001 = shalt.err (!%p1998_p1)
}
  0x2e   :  { %s2217_s28 = smov 64   ;;  %s2218_s20 = smov 4  }
  0x2f   :  { %74 = dma.hbm_to_vmem [thread:$0]  %s2574_s3, 1024, %s69_s23, [#allocation9], %s2217_s28, %s2217_s28, %s2218_s20  }
  0x30   :  { %s2002_s29 = scalar_lea.hbm %s2578_s7, 1024 }
  0x31   :  { %p2003_p2 = scmp.ne.s32.totalorder %s2578_s7, %s2002_s29  ;;  %p2006_p3 = scmp.lt.u32.totalorder %s2002_s29, %s2578_s7 }
  0x33   :  { %p2008_p4 = pnand %p2006_p3, %p2003_p2 }
  0x35   :  { %2011 = shalt.err (!%p2008_p4)
}
  0x36   :  { %s2012_s1 = scalar_lea.vmem %s97_s26, 1024  ;;  %p2017_p6 = scmp.lt.s32.totalorder %s97_s26, %s97_s26 }
  0x37   :  { %p2013_p5 = scmp.ne.s32.totalorder %s97_s26, %s2012_s1  ;;  %p2018_p7 = scmp.lt.s32.totalorder %s2012_s1, %s2012_s1 }
  0x39   :  { %p2019_p8 = por %p2018_p7, %p2017_p6 }
  0x3b   :  { %p2020_p9 = pnand %p2019_p8, %p2013_p5 }
  0x3d   :  { %2023 = shalt.err (!%p2020_p9)
}
  0x3e   :  { %102 = dma.hbm_to_vmem [thread:$0]  %s2578_s7, 1024, %s97_s26, [#allocation12], %s2217_s28, %s2217_s28, %s2218_s20  }
  0x3f   :  { %s2219_s25 = smov [#allocation14]   ;;  %s2220_s22 = smov [#allocation2]  }
  0x40   :  { %s124_s21 = sshll.u32 %s2219_s25, 4  ;;  %s34_s24 = sshll.u32 %s2220_s22, 4  ;;  %s125_s21 = int_to_ptr.vmem [resolvable:$true] %s124_s21  ;;  %s35_s24 = int_to_ptr.vmem [resolvable:$true] %s34_s24 }
  0x41   :  { %s2024_s0 = scalar_lea.hbm %s2582_s11, 1024 }
  0x42   :  { %p2025_p10 = scmp.ne.s32.totalorder %s2582_s11, %s2024_s0  ;;  %p2028_p11 = scmp.lt.u32.totalorder %s2024_s0, %s2582_s11 }
  0x44   :  { %p2030_p12 = pnand %p2028_p11, %p2025_p10 }
  0x46   :  { %2033 = shalt.err (!%p2030_p12)
}
  0x47   :  { %s2034_s7 = scalar_lea.vmem %s125_s21, 1024  ;;  %p2039_p0 = scmp.lt.s32.totalorder %s125_s21, %s125_s21 }
  0x48   :  { %p2035_p13 = scmp.ne.s32.totalorder %s125_s21, %s2034_s7  ;;  %p2040_p1 = scmp.lt.s32.totalorder %s2034_s7, %s2034_s7 }
  0x4a   :  { %p2041_p2 = por %p2040_p1, %p2039_p0 }
  0x4c   :  { %p2042_p3 = pnand %p2041_p2, %p2035_p13 }
  0x4e   :  { %2045 = shalt.err (!%p2042_p3)
}
  0x4f   :  { %130 = dma.hbm_to_vmem [thread:$0]  %s2582_s11, 1024, %s125_s21, [#allocation15], %s2217_s28, %s2217_s28, %s2218_s20  }
  0x50   :  { %s2594_s22 = sld [smem:[#allocation27_spill]] }
  0x56   :  { %s2046_s27 = scalar_lea.hbm %s2594_s22, 512 }
  0x57   :  { %p2047_p4 = scmp.ne.s32.totalorder %s2594_s22, %s2046_s27  ;;  %p2050_p5 = scmp.lt.u32.totalorder %s2046_s27, %s2594_s22 }
  0x59   :  { %p2052_p6 = pnand %p2050_p5, %p2047_p4 }
  0x5b   :  { %2055 = shalt.err (!%p2052_p6)
}
  0x5c   :  { %s2056_s19 = scalar_lea.vmem %s35_s24, 512  ;;  %p2061_p8 = scmp.lt.s32.totalorder %s35_s24, %s35_s24 }
  0x5d   :  { %p2057_p7 = scmp.ne.s32.totalorder %s35_s24, %s2056_s19  ;;  %p2062_p9 = scmp.lt.s32.totalorder %s2056_s19, %s2056_s19 }
  0x5f   :  { %p2063_p10 = por %p2062_p9, %p2061_p8 }
  0x61   :  { %p2064_p11 = pnand %p2063_p10, %p2057_p7 }
  0x63   :  { %2067 = shalt.err (!%p2064_p11)
}
  0x64   :  { %40 = dma.hbm_to_vmem [thread:$0]  %s2594_s22, 512, %s35_s24, [#allocation3], %s2217_s28, %s2217_s28, %s2218_s20  }
  0x65   :  { %s2221_s1 = smov [#allocation7]   ;;  %s2068_s23 = scalar_lea.hbm %s2573_s2, 1024 }
  0x66   :  { %s56_s7 = sshll.u32 %s2221_s1, 4  ;;  %p2069_p12 = scmp.ne.s32.totalorder %s2573_s2, %s2068_s23  ;;  %s57_s7 = int_to_ptr.vmem [resolvable:$true] %s56_s7 }
  0x67   :  { %p2072_p13 = scmp.lt.u32.totalorder %s2068_s23, %s2573_s2 }
  0x69   :  { %p2074_p0 = pnand %p2072_p13, %p2069_p12 }
  0x6b   :  { %2077 = shalt.err (!%p2074_p0)
}
  0x6c   :  { %s2078_s30 = scalar_lea.vmem %s57_s7, 1024  ;;  %p2083_p2 = scmp.lt.s32.totalorder %s57_s7, %s57_s7 }
  0x6d   :  { %p2079_p1 = scmp.ne.s32.totalorder %s57_s7, %s2078_s30  ;;  %p2084_p3 = scmp.lt.s32.totalorder %s2078_s30, %s2078_s30 }
  0x6f   :  { %p2085_p4 = por %p2084_p3, %p2083_p2 }
  0x71   :  { %p2086_p5 = pnand %p2085_p4, %p2079_p1 }
  0x73   :  { %2089 = shalt.err (!%p2086_p5)
}
  0x74   :  { %s2222_s24 = smov 128   ;;  %s2223_s22 = smov 8  }
  0x75   :  { %62 = dma.hbm_to_vmem [thread:$0]  %s2573_s2, 1024, %s57_s7, [#allocation6], %s2222_s24, %s2222_s24, %s2223_s22  }
  0x76   :  { %s2224_s11 = smov [#allocation10]   ;;  %s2225_s1 = smov [#allocation13]  }
  0x77   :  { %s82_s21 = sshll.u32 %s2224_s11, 4  ;;  %s110_s26 = sshll.u32 %s2225_s1, 4  ;;  %s83_s21 = int_to_ptr.vmem [resolvable:$true] %s82_s21  ;;  %s2405_s26 = int_to_ptr.vmem [resolvable:$true] %s110_s26 }
  0x78   :  { %s2090_s25 = scalar_lea.hbm %s2576_s5, 1024 }
  0x79   :  { %p2091_p6 = scmp.ne.s32.totalorder %s2576_s5, %s2090_s25  ;;  %p2094_p7 = scmp.lt.u32.totalorder %s2090_s25, %s2576_s5 }
  0x7b   :  { %p2096_p8 = pnand %p2094_p7, %p2091_p6 }
  0x7d   :  { %2099 = shalt.err (!%p2096_p8)
}
  0x7e   :  { %s2100_s2 = scalar_lea.vmem %s83_s21, 1024  ;;  %p2105_p10 = scmp.lt.s32.totalorder %s83_s21, %s83_s21 }
  0x7f   :  { %p2101_p9 = scmp.ne.s32.totalorder %s83_s21, %s2100_s2  ;;  %p2106_p11 = scmp.lt.s32.totalorder %s2100_s2, %s2100_s2 }
  0x81   :  { %p2107_p12 = por %p2106_p11, %p2105_p10 }
  0x83   :  { %p2108_p13 = pnand %p2107_p12, %p2101_p9 }
  0x85   :  { %2111 = shalt.err (!%p2108_p13)
}
  0x86   :  { %88 = dma.hbm_to_vmem [thread:$0]  %s2576_s5, 1024, %s83_s21, [#allocation9], %s2217_s28, %s2217_s28, %s2218_s20  }
  0x87   :  { %s2112_s19 = scalar_lea.hbm %s2580_s9, 1024 }
  0x88   :  { %p2113_p0 = scmp.ne.s32.totalorder %s2580_s9, %s2112_s19  ;;  %p2116_p1 = scmp.lt.u32.totalorder %s2112_s19, %s2580_s9 }
  0x8a   :  { %p2118_p2 = pnand %p2116_p1, %p2113_p0 }
  0x8c   :  { %2121 = shalt.err (!%p2118_p2)
}
  0x8d   :  { %s2122_s25 = scalar_lea.vmem %s2405_s26, 1024  ;;  %p2127_p4 = scmp.lt.s32.totalorder %s2405_s26, %s2405_s26 }
  0x8e   :  { %p2123_p3 = scmp.ne.s32.totalorder %s2405_s26, %s2122_s25  ;;  %p2128_p5 = scmp.lt.s32.totalorder %s2122_s25, %s2122_s25 }
  0x90   :  { %p2129_p6 = por %p2128_p5, %p2127_p4 }
  0x92   :  { %p2130_p7 = pnand %p2129_p6, %p2123_p3 }
  0x94   :  { %2133 = shalt.err (!%p2130_p7)
}
  0x95   :  { %116 = dma.hbm_to_vmem [thread:$0]  %s2580_s9, 1024, %s2405_s26, [#allocation12], %s2217_s28, %s2217_s28, %s2218_s20  }
  0x96   :  { %s2226_s27 = smov [#allocation16]   ;;  %s2227_s0 = smov [#allocation17]  }
  0x97   :  { %s138_s29 = sshll.u32 %s2226_s27, 4  ;;  %s152_s30 = sshll.u32 %s2227_s0, 4  ;;  %s139_s29 = int_to_ptr.vmem [resolvable:$true] %s138_s29  ;;  %s2442_s30 = int_to_ptr.vmem [resolvable:$true] %s152_s30 }
  0x98   :  { %s2134_s24 = scalar_lea.hbm %s2584_s13, 1024 }
  0x99   :  { %p2135_p8 = scmp.ne.s32.totalorder %s2584_s13, %s2134_s24  ;;  %p2138_p9 = scmp.lt.u32.totalorder %s2134_s24, %s2584_s13 }
  0x9b   :  { %p2140_p10 = pnand %p2138_p9, %p2135_p8 }
  0x9d   :  { %2143 = shalt.err (!%p2140_p10)
}
  0x9e   :  { %s2144_s9 = scalar_lea.vmem %s139_s29, 1024  ;;  %p2149_p12 = scmp.lt.s32.totalorder %s139_s29, %s139_s29 }
  0x9f   :  { %p2145_p11 = scmp.ne.s32.totalorder %s139_s29, %s2144_s9  ;;  %p2150_p13 = scmp.lt.s32.totalorder %s2144_s9, %s2144_s9 }
  0xa1   :  { %p2151_p0 = por %p2150_p13, %p2149_p12 }
  0xa3   :  { %p2152_p1 = pnand %p2151_p0, %p2145_p11 }
  0xa5   :  { %2155 = shalt.err (!%p2152_p1)
}
  0xa6   :  { %144 = dma.hbm_to_vmem [thread:$0]  %s2584_s13, 1024, %s139_s29, [#allocation15], %s2217_s28, %s2217_s28, %s2218_s20  }
  0xa7   :  { %s2156_s25 = scalar_lea.hbm %s2586_s15, 1024 }
  0xa8   :  { %p2157_p2 = scmp.ne.s32.totalorder %s2586_s15, %s2156_s25  ;;  %p2160_p3 = scmp.lt.u32.totalorder %s2156_s25, %s2586_s15 }
  0xaa   :  { %p2162_p4 = pnand %p2160_p3, %p2157_p2 }
  0xac   :  { %2165 = shalt.err (!%p2162_p4)
}
  0xad   :  { %s2166_s2 = scalar_lea.vmem %s2442_s30, 1024  ;;  %p2171_p6 = scmp.lt.s32.totalorder %s2442_s30, %s2442_s30 }
  0xae   :  { %p2167_p5 = scmp.ne.s32.totalorder %s2442_s30, %s2166_s2  ;;  %p2172_p7 = scmp.lt.s32.totalorder %s2166_s2, %s2166_s2 }
  0xb0   :  { %p2173_p8 = por %p2172_p7, %p2171_p6 }
  0xb2   :  { %p2174_p9 = pnand %p2173_p8, %p2167_p5 }
  0xb4   :  { %2177 = shalt.err (!%p2174_p9)
}
  0xb5   :  { %158 = dma.hbm_to_vmem [thread:$0]  %s2586_s15, 1024, %s2442_s30, [#allocation18], %s2217_s28, %s2217_s28, %s2218_s20  }
  0xb6   :  { %2200 = dma.done.wait [#allocation3], 512  }
  0xb7   :  { %2201 = vsyncadd [#allocation3], 4294966784 }
  0xb8   :  { %2202 = dma.done.wait [#allocation6], 1088  }
  0xb9   :  { %2203 = vsyncadd [#allocation6], 4294966208 }
  0xba   :  { %2204 = dma.done.wait [#allocation9], 2048  }
  0xbb   :  { %2205 = vsyncadd [#allocation9], 4294965248 }
  0xbc   :  { %2206 = dma.done.wait [#allocation12], 2048  }
  0xbd   :  { %2207 = vsyncadd [#allocation12], 4294965248 }
  0xbe   :  { %2208 = dma.done.wait [#allocation15], 2048  }
  0xbf   :  { %2209 = vsyncadd [#allocation15], 4294965248 }
  0xc0   :  { %2210 = dma.done.wait [#allocation18], 1024  }
  0xc1   :  { %2211 = vsyncadd [#allocation18], 4294966272  ;;  %v1898_v0 = vld [vmem:[#allocation8] sm:$0xff]   ;;  %v1899_v1 = vld [vmem:[#allocation8 + $0x8] sm:$0xff]   ;;  %vm668_vm0 = vcmask 523264   ;;  %vm2229_vm1 = vmmov 0  }
  0xc2   :  { %1661 = vmatprep.subr.bf16.mxu0 %v1898_v0  ;;  %v1900_v2 = vld [vmem:[#allocation8 + $0x10] sm:$0xff]   ;;  %v1901_v3 = vld [vmem:[#allocation8 + $0x18] sm:$0xff]   ;;  %v192_v4 = vld [vmem:[#allocation7] sm:$0xff]  ;;  %s2230_s11 = smov [#allocation19]  }
  0xc3   :  { %1662 = vmatpush3.bf16.msra.mxu0 %v1898_v0  ;;  %v193_v5 = vld [vmem:[#allocation7 + $0x8] sm:$0xff]  ;;  %v1902_v7 = vld [vmem:[#allocation8 + $0x20] sm:$0xff]   ;;  %v1908_v10 = vld [vmem:[#allocation10 + $0x10] sm:$0xff]   ;;  %s1460_s9 = sshll.u32 %s2230_s11, 4  ;;  %s1461_s9 = int_to_ptr.vmem [resolvable:$true] %s1460_s9 }
  0xc4   :  { %1663 = vmatprep.subr.bf16.mxu0 %v1899_v1  ;;  %v200_v6 = vpack.c.bf16 %v193_v5, %v192_v4  ;;  %v1906_v8 = vld [vmem:[#allocation10] sm:$0xff]   ;;  %v1907_v9 = vld [vmem:[#allocation10 + $0x8] sm:$0xff]   ;;  %v1909_v12 = vld [vmem:[#allocation10 + $0x18] sm:$0xff]   ;;  %p2183_p11 = scmp.lt.s32.totalorder %s1461_s9, %s1461_s9 }
  0xc5   :  { %1685 = vmatprep.subr.bf16.mxu1 %v1906_v8  ;;  %v1903_v11 = vld [vmem:[#allocation8 + $0x28] sm:$0xff]   ;;  %v1904_v13 = vld [vmem:[#allocation8 + $0x30] sm:$0xff]   ;;  %v1910_v14 = vld [vmem:[#allocation10 + $0x20] sm:$0xff]  }
  0xc6   :  { %1677 = vmatprep.mubr.bf16.mxu0 %v200_v6  ;;  %1686 = vmatpush3.bf16.msra.mxu1 %v1906_v8  ;;  %v1905_v15 = vld [vmem:[#allocation8 + $0x38] sm:$0xff]   ;;  %v194_v16 = vld [vmem:[#allocation7 + $0x10] sm:$0xff]  ;;  %v1911_v18 = vld [vmem:[#allocation10 + $0x28] sm:$0xff]  }
  0xc7   :  { %1664 = vmatpush3.bf16.msra.mxu0 %v1899_v1  ;;  %1687 = vmatprep.subr.bf16.mxu1 %v1907_v9  ;;  %v195_v17 = vld [vmem:[#allocation7 + $0x18] sm:$0xff]  ;;  %v196_v19 = vld [vmem:[#allocation7 + $0x20] sm:$0xff]  ;;  %v197_v20 = vld [vmem:[#allocation7 + $0x28] sm:$0xff] }
  0xc8   :  { %1665 = vmatprep.subr.bf16.mxu0 %v1900_v2  ;;  %v201_v21 = vpack.c.bf16 %v195_v17, %v194_v16  ;;  %v202_v22 = vpack.c.bf16 %v197_v20, %v196_v19  ;;  %v198_v23 = vld [vmem:[#allocation7 + $0x30] sm:$0xff]  ;;  %v199_v24 = vld [vmem:[#allocation7 + $0x38] sm:$0xff]  ;;  %v1914_v28 = vld [vmem:[#allocation11] sm:$0xff]  }
  0xc9   :  { %v203_v25 = vpack.c.bf16 %v199_v24, %v198_v23  ;;  %v1912_v26 = vld [vmem:[#allocation10 + $0x30] sm:$0xff]   ;;  %v1913_v27 = vld [vmem:[#allocation10 + $0x38] sm:$0xff]   ;;  %v1915_v29 = vld [vmem:[#allocation11 + $0x8] sm:$0xff]  }
  0xca   :  { %1688 = vmatpush3.bf16.msra.mxu1 %v1907_v9  ;;  %v1916_v30 = vld [vmem:[#allocation11 + $0x10] sm:$0xff]   ;;  %v1917_v31 = vld [vmem:[#allocation11 + $0x18] sm:$0xff]   ;;  %v1918_v32 = vld [vmem:[#allocation11 + $0x20] sm:$0xff]  }
  0xcb   :  { %1666 = vmatpush3.bf16.msra.mxu0 %v1900_v2  ;;  %1689 = vmatprep.subr.bf16.mxu1 %v1908_v10  ;;  %v1919_v33 = vld [vmem:[#allocation11 + $0x28] sm:$0xff]   ;;  %v1474_v34 = vld [vmem:[%s2575_s4] ss:$0 sm:$0xff]  ;;  %v1920_v63 = vld [vmem:[#allocation11 + $0x30] sm:$0xff]  }
  0xcc   :  { %1667 = vmatprep.subr.bf16.mxu0 %v1901_v3  ;;  %v1921_v0 = vld [vmem:[#allocation11 + $0x38] sm:$0xff]  }
  0xcd   :  { %v1483_v1 = vld [vmem:[%s2577_s6] ss:$0 sm:$0xff] }
  0xce   :  { %1690 = vmatpush3.bf16.msra.mxu1 %v1908_v10 }
  0xcf   :  { %1668 = vmatpush3.bf16.msra.mxu0 %v1901_v3  ;;  %1691 = vmatprep.subr.bf16.mxu1 %v1909_v12 }
  0xd0   :  { %1669 = vmatprep.subr.bf16.mxu0 %v1902_v7 }
  0xd2   :  { %1692 = vmatpush3.bf16.msra.mxu1 %v1909_v12 }
  0xd3   :  { %1670 = vmatpush3.bf16.msra.mxu0 %v1902_v7  ;;  %1693 = vmatprep.subr.bf16.mxu1 %v1910_v14 }
  0xd4   :  { %1671 = vmatprep.subr.bf16.mxu0 %v1903_v11 }
  0xd6   :  { %1694 = vmatpush3.bf16.msra.mxu1 %v1910_v14 }
  0xd7   :  { %1672 = vmatpush3.bf16.msra.mxu0 %v1903_v11  ;;  %1695 = vmatprep.subr.bf16.mxu1 %v1911_v18 }
  0xd8   :  { %1673 = vmatprep.subr.bf16.mxu0 %v1904_v13 }
  0xda   :  { %1696 = vmatpush3.bf16.msra.mxu1 %v1911_v18 }
  0xdb   :  { %1674 = vmatpush3.bf16.msra.mxu0 %v1904_v13  ;;  %1697 = vmatprep.subr.bf16.mxu1 %v1912_v26 }
  0xdc   :  { %1675 = vmatprep.subr.bf16.mxu0 %v1905_v15 }
  0xde   :  { %1698 = vmatpush3.bf16.msra.mxu1 %v1912_v26 }
  0xdf   :  { %1676 = vmatpush3.bf16.msra.mxu0 %v1905_v15  ;;  %1699 = vmatprep.subr.bf16.mxu1 %v1913_v27 }
  0xe0   :  { %1709 = vmatprep.subr.bf16.mxu0 %v1914_v28 }
  0xe2   :  { %1678 = vmatmul.mubr.bf16.vlgmr.msra.gmra.mrb[0].mxu0 %v201_v21  ;;  %1700 = vmatpush3.bf16.msra.mxu1 %v1913_v27 }
  0xe3   :  { %1681 = vmatprep.mubr.bf16.mxu0 %v202_v22  ;;  %1710 = vmatpush3.bf16.msra.mxu0 %v1914_v28 }
  0xe4   :  { %1711 = vmatprep.subr.bf16.mxu0 %v1915_v29 }
  0xe7   :  { %1712 = vmatpush3.bf16.msra.mxu0 %v1915_v29 }
  0xe8   :  { %1713 = vmatprep.subr.bf16.mxu0 %v1916_v30 }
  0xea   :  { %1682 = vmatmul.mubr.bf16.gmra.mrb[4].mxu0 %v203_v25 }
  0xeb   :  { %1714 = vmatpush3.bf16.msra.mxu0 %v1916_v30  ;;  %v2485_v30 = vld [vmem:[#allocation2] sm:$0xff]  }
  0xec   :  { %1715 = vmatprep.subr.bf16.mxu0 %v1917_v31 }
  0xef   :  { %1716 = vmatpush3.bf16.msra.mxu0 %v1917_v31 }
  0xf0   :  { %1717 = vmatprep.subr.bf16.mxu0 %v1918_v32 }
  0xf3   :  { %1718 = vmatpush3.bf16.msra.mxu0 %v1918_v32 }
  0xf4   :  { %1719 = vmatprep.subr.bf16.mxu0 %v1919_v33 }
  0xf7   :  { %1720 = vmatpush3.bf16.msra.mxu0 %v1919_v33 }
  0xf8   :  { %1721 = vmatprep.subr.bf16.mxu0 %v1920_v63 }
  0xfb   :  { %1722 = vmatpush3.bf16.msra.mxu0 %v1920_v63 }
  0xfc   :  { %1723 = vmatprep.subr.bf16.mxu0 %v1921_v0 }
  0xff   :  { %1724 = vmatpush3.bf16.msra.mxu0 %v1921_v0 }
 0x1b5   :  { %v1679_v35 = vpop.f32.mrb[0].mxu0 }
 0x1b6   :  { %v318_v36 = vadd.f32 %v1679_v35, %v1474_v34  ;;  %v309_v37 = vpop.f32.mrb[1].mxu0 }
 0x1b7   :  { %v310_v38 = vadd.f32 %v1474_v34, %v309_v37  ;;  %v1680_v39 = vpop.f32.mrb[2].mxu0 }
 0x1b8   :  { %v321_v40 = vadd.f32 %v1680_v39, %v1474_v34  ;;  %v312_v41 = vpop.f32.mrb[3].mxu0  ;;  %v342_v43 = vmax.f32 %v318_v36, 0.0 }
 0x1b9   :  { %v313_v42 = vadd.f32 %v1474_v34, %v312_v41  ;;  %v340_v45 = vmax.f32 %v310_v38, 0.0 }
 0x1ba   :  { %v343_v44 = vmax.f32 %v321_v40, 0.0 }
 0x1bb   :  { %v341_v46 = vmax.f32 %v313_v42, 0.0 }
 0x1bc   :  { %v349_v47 = vpack.c.bf16 %v343_v44, %v342_v43  ;;  %v1926_v43 = vld [vmem:[#allocation13] sm:$0xff]  }
 0x1bd   :  { %v1683_v48 = vpop.f32.mrb[4].mxu0  ;;  %v348_v49 = vpack.c.bf16 %v341_v46, %v340_v45  ;;  %v2491_v44 = vld [vmem:[#allocation2 + $0x8] sm:$0xff]   ;;  %v2493_v45 = vld [vmem:[#allocation2 + $0x10] sm:$0xff]  }
 0x1be   :  { %v334_v50 = vadd.f32 %v1683_v48, %v1474_v34  ;;  %v325_v51 = vpop.f32.mrb[5].mxu0  ;;  %v1927_v46 = vld [vmem:[#allocation13 + $0x8] sm:$0xff]   ;;  %v2499_v48 = vld [vmem:[#allocation2 + $0x18] sm:$0xff]  }
 0x1bf   :  { %v326_v52 = vadd.f32 %v1474_v34, %v325_v51  ;;  %v1684_v53 = vpop.f32.mrb[6].mxu0  ;;  %1701 = vmatprep.mubr.bf16.mxu1 %v348_v49  ;;  %v1929_v49 = vld [vmem:[#allocation13 + $0x18] sm:$0xff]   ;;  %v1931_v51 = vld [vmem:[#allocation13 + $0x28] sm:$0xff]  }
 0x1c0   :  { %v337_v54 = vadd.f32 %v1684_v53, %v1474_v34  ;;  %v328_v55 = vpop.f32.mrb[7].mxu0  ;;  %1702 = vmatmul.mubr.bf16.vlgmr.msra.gmra.mrb[0].mxu1 %v349_v47  ;;  %v346_v57 = vmax.f32 %v334_v50, 0.0  ;;  %v1928_v47 = vld [vmem:[#allocation13 + $0x10] sm:$0xff]   ;;  %v1930_v50 = vld [vmem:[#allocation13 + $0x20] sm:$0xff]   ;;  %v1933_v53 = vld [vmem:[#allocation13 + $0x38] sm:$0xff]  }
 0x1c1   :  { %v329_v56 = vadd.f32 %v1474_v34, %v328_v55  ;;  %v344_v59 = vmax.f32 %v326_v52, 0.0  ;;  %v1932_v52 = vld [vmem:[#allocation13 + $0x30] sm:$0xff]  }
 0x1c2   :  { %v347_v58 = vmax.f32 %v337_v54, 0.0  ;;  %v1500_v54 = vld [vmem:[%s2579_s8] ss:$0 sm:$0xff] }
 0x1c3   :  { %v345_v60 = vmax.f32 %v329_v56, 0.0 }
 0x1c4   :  { %v351_v61 = vpack.c.bf16 %v347_v58, %v346_v57 }
 0x1c5   :  { %v350_v62 = vpack.c.bf16 %v345_v60, %v344_v59 }
 0x1c7   :  { %1705 = vmatprep.mubr.bf16.mxu1 %v350_v62 }
 0x1c8   :  { %1706 = vmatmul.mubr.bf16.gmra.mrb[4].mxu1 %v351_v61 }
 0x1c9   :  { %1741 = vmatprep.mubr.msk.bf16.mxu1 %vm668_vm0, %v2485_v30 }
 0x293   :  { %v1703_v2 = vpop.f32.mrb[0].mxu1 }
 0x294   :  { %v466_v3 = vadd.f32 %v1703_v2, %v1483_v1  ;;  %v457_v4 = vpop.f32.mrb[1].mxu1 }
 0x295   :  { %v458_v5 = vadd.f32 %v1483_v1, %v457_v4  ;;  %v1704_v6 = vpop.f32.mrb[2].mxu1 }
 0x296   :  { %v469_v7 = vadd.f32 %v1704_v6, %v1483_v1  ;;  %v460_v8 = vpop.f32.mrb[3].mxu1  ;;  %v490_v10 = vmax.f32 %v466_v3, 0.0 }
 0x297   :  { %v461_v9 = vadd.f32 %v1483_v1, %v460_v8  ;;  %v488_v12 = vmax.f32 %v458_v5, 0.0 }
 0x298   :  { %v491_v11 = vmax.f32 %v469_v7, 0.0 }
 0x299   :  { %v489_v13 = vmax.f32 %v461_v9, 0.0 }
 0x29a   :  { %v505_v14 = vpack.c.bf16 %v491_v11, %v490_v10 }
 0x29b   :  { %v504_v15 = vpack.c.bf16 %v489_v13, %v488_v12  ;;  %v1707_v16 = vpop.f32.mrb[4].mxu1 }
 0x29c   :  { %v482_v17 = vadd.f32 %v1707_v16, %v1483_v1  ;;  %v473_v18 = vpop.f32.mrb[5].mxu1 }
 0x29d   :  { %v474_v19 = vadd.f32 %v1483_v1, %v473_v18  ;;  %v1708_v20 = vpop.f32.mrb[6].mxu1  ;;  %1725 = vmatprep.mubr.bf16.mxu0 %v504_v15 }
 0x29e   :  { %v485_v21 = vadd.f32 %v1708_v20, %v1483_v1  ;;  %v476_v22 = vpop.f32.mrb[7].mxu1  ;;  %1726 = vmatmul.mubr.bf16.vlgmr.msra.gmra.mrb[8].mxu0 %v505_v14  ;;  %v494_v24 = vmax.f32 %v482_v17, 0.0 }
 0x29f   :  { %v477_v23 = vadd.f32 %v1483_v1, %v476_v22  ;;  %v492_v26 = vmax.f32 %v474_v19, 0.0 }
 0x2a0   :  { %v495_v25 = vmax.f32 %v485_v21, 0.0 }
 0x2a1   :  { %v493_v27 = vmax.f32 %v477_v23, 0.0 }
 0x2a2   :  { %v507_v28 = vpack.c.bf16 %v495_v25, %v494_v24 }
 0x2a3   :  { %v506_v29 = vpack.c.bf16 %v493_v27, %v492_v26 }
 0x2a5   :  { %1729 = vmatprep.mubr.bf16.mxu0 %v506_v29 }
 0x2a6   :  { %1730 = vmatmul.mubr.bf16.gmra.mrb[12].mxu0 %v507_v28 }
 0x2a7   :  { %1781 = vmatprep.mubr.msk.bf16.mxu0 %vm668_vm0, %v2485_v30 }
 0x371   :  { %v1727_v31 = vpop.f32.mrb[8].mxu0 }
 0x372   :  { %v606_v32 = vpop.f32.mrb[9].mxu0 }
 0x373   :  { %v1728_v33 = vpop.f32.mrb[10].mxu0 }
 0x374   :  { %v638_v34 = vpack.c.bf16 %v1728_v33, %v1727_v31  ;;  %v609_v35 = vpop.f32.mrb[11].mxu0  ;;  %v1936_v33 = vld [vmem:[#allocation14 + $0x10] sm:$0xff]  }
 0x375   :  { %v637_v36 = vpack.c.bf16 %v609_v35, %v606_v32  ;;  %v1935_v32 = vld [vmem:[#allocation14 + $0x8] sm:$0xff]   ;;  %v1938_v35 = vld [vmem:[#allocation14 + $0x20] sm:$0xff]  }
 0x377   :  { %1733 = vmatprep.subr.bf16.mxu1 %v637_v36 }
 0x378   :  { %1734 = vmatpush3.bf16.msra.mxu1 %v637_v36  ;;  %v1939_v36 = vld [vmem:[#allocation14 + $0x28] sm:$0xff]  }
 0x379   :  { %v1731_v37 = vpop.f32.mrb[12].mxu0  ;;  %1735 = vmatprep.subr.bf16.mxu1 %v638_v34 }
 0x37a   :  { %v622_v38 = vpop.f32.mrb[13].mxu0 }
 0x37b   :  { %v1732_v39 = vpop.f32.mrb[14].mxu0 }
 0x37c   :  { %v640_v40 = vpack.c.bf16 %v1732_v39, %v1731_v37  ;;  %v625_v41 = vpop.f32.mrb[15].mxu0  ;;  %1736 = vmatpush3.bf16.msra.mxu1 %v638_v34  ;;  %v1937_v34 = vld [vmem:[#allocation14 + $0x18] sm:$0xff]   ;;  %v1940_v37 = vld [vmem:[#allocation14 + $0x30] sm:$0xff]  }
 0x37d   :  { %v639_v42 = vpack.c.bf16 %v625_v41, %v622_v38  ;;  %v1941_v38 = vld [vmem:[#allocation14 + $0x38] sm:$0xff]  }
 0x37e   :  { %v1517_v39 = vld [vmem:[%s2581_s10] ss:$0 sm:$0xff] }
 0x37f   :  { %1737 = vmatprep.subr.bf16.mxu1 %v639_v42 }
 0x380   :  { %1738 = vmatpush3.bf16.msra.mxu1 %v639_v42 }
 0x381   :  { %1739 = vmatprep.subr.bf16.mxu1 %v640_v40 }
 0x384   :  { %1740 = vmatpush3.bf16.msra.mxu1 %v640_v40 }
 0x385   :  { %1749 = vmatprep.subr.bf16.mxu1 %v1926_v43 }
 0x387   :  { %1742 = vmatmul.mubr.msk.bf16.vlgmr.msra.gmra.mrb[8].mxu1 %vm668_vm0, %v2491_v44 }
 0x388   :  { %1745 = vmatprep.mubr.msk.bf16.mxu1 %vm668_vm0, %v2493_v45  ;;  %1750 = vmatpush3.bf16.msra.mxu1 %v1926_v43 }
 0x389   :  { %1751 = vmatprep.subr.bf16.mxu1 %v1927_v46 }
 0x38c   :  { %1752 = vmatpush3.bf16.msra.mxu1 %v1927_v46 }
 0x38d   :  { %1753 = vmatprep.subr.bf16.mxu1 %v1928_v47 }
 0x38f   :  { %1746 = vmatmul.mubr.msk.bf16.gmra.mrb[12].mxu1 %vm668_vm0, %v2499_v48 }
 0x390   :  { %1754 = vmatpush3.bf16.msra.mxu1 %v1928_v47 }
 0x391   :  { %1755 = vmatprep.subr.bf16.mxu1 %v1929_v49 }
 0x394   :  { %1756 = vmatpush3.bf16.msra.mxu1 %v1929_v49 }
 0x395   :  { %1757 = vmatprep.subr.bf16.mxu1 %v1930_v50 }
 0x398   :  { %1758 = vmatpush3.bf16.msra.mxu1 %v1930_v50 }
 0x399   :  { %1759 = vmatprep.subr.bf16.mxu1 %v1931_v51 }
 0x39c   :  { %1760 = vmatpush3.bf16.msra.mxu1 %v1931_v51 }
 0x39d   :  { %1761 = vmatprep.subr.bf16.mxu1 %v1932_v52 }
 0x3a0   :  { %1762 = vmatpush3.bf16.msra.mxu1 %v1932_v52 }
 0x3a1   :  { %1763 = vmatprep.subr.bf16.mxu1 %v1933_v53 }
 0x3a4   :  { %1764 = vmatpush3.bf16.msra.mxu1 %v1933_v53 }
 0x45a   :  { %v1743_v55 = vpop.f32.mrb[8].mxu1 }
 0x45b   :  { %v724_v56 = vadd.f32 %v1743_v55, %v1500_v54  ;;  %v715_v57 = vpop.f32.mrb[9].mxu1 }
 0x45c   :  { %v716_v58 = vadd.f32 %v1500_v54, %v715_v57  ;;  %v1744_v59 = vpop.f32.mrb[10].mxu1 }
 0x45d   :  { %v727_v60 = vadd.f32 %v1744_v59, %v1500_v54  ;;  %v718_v61 = vpop.f32.mrb[11].mxu1  ;;  %v748_v63 = vmax.f32 %v724_v56, 0.0 }
 0x45e   :  { %v719_v62 = vadd.f32 %v1500_v54, %v718_v61  ;;  %v746_v1 = vmax.f32 %v716_v58, 0.0 }
 0x45f   :  { %v749_v0 = vmax.f32 %v727_v60, 0.0 }
 0x460   :  { %v747_v2 = vmax.f32 %v719_v62, 0.0 }
 0x461   :  { %v755_v3 = vpack.c.bf16 %v749_v0, %v748_v63 }
 0x462   :  { %v754_v4 = vpack.c.bf16 %v747_v2, %v746_v1  ;;  %v1747_v5 = vpop.f32.mrb[12].mxu1 }
 0x463   :  { %v740_v6 = vadd.f32 %v1747_v5, %v1500_v54  ;;  %v731_v7 = vpop.f32.mrb[13].mxu1 }
 0x464   :  { %v732_v8 = vadd.f32 %v1500_v54, %v731_v7  ;;  %v1748_v9 = vpop.f32.mrb[14].mxu1  ;;  %1765 = vmatprep.mubr.bf16.mxu1 %v754_v4 }
 0x465   :  { %v743_v10 = vadd.f32 %v1748_v9, %v1500_v54  ;;  %v734_v11 = vpop.f32.mrb[15].mxu1  ;;  %1766 = vmatmul.mubr.bf16.vlgmr.msra.gmra.mrb[16].mxu1 %v755_v3  ;;  %v752_v13 = vmax.f32 %v740_v6, 0.0 }
 0x466   :  { %v735_v12 = vadd.f32 %v1500_v54, %v734_v11  ;;  %v750_v15 = vmax.f32 %v732_v8, 0.0 }
 0x467   :  { %v753_v14 = vmax.f32 %v743_v10, 0.0 }
 0x468   :  { %v751_v16 = vmax.f32 %v735_v12, 0.0 }
 0x469   :  { %v757_v17 = vpack.c.bf16 %v753_v14, %v752_v13 }
 0x46a   :  { %v756_v18 = vpack.c.bf16 %v751_v16, %v750_v15 }
 0x46c   :  { %1769 = vmatprep.mubr.bf16.mxu1 %v756_v18 }
 0x46d   :  { %1770 = vmatmul.mubr.bf16.gmra.mrb[20].mxu1 %v757_v17 }
 0x46e   :  { %1821 = vmatprep.mubr.msk.bf16.mxu1 %vm668_vm0, %v2485_v30  ;;  %v1934_v30 = vld [vmem:[#allocation14] sm:$0xff]  }
 0x538   :  { %v1767_v19 = vpop.f32.mrb[16].mxu1 }
 0x539   :  { %v856_v20 = vpop.f32.mrb[17].mxu1 }
 0x53a   :  { %v1768_v21 = vpop.f32.mrb[18].mxu1 }
 0x53b   :  { %v888_v22 = vpack.c.bf16 %v1768_v21, %v1767_v19  ;;  %v859_v23 = vpop.f32.mrb[19].mxu1  ;;  %v2228_v19 = vmov 0.0   ;;  %v1946_v21 = vld [vmem:[#allocation16 + $0x20] sm:$0xff]  }
 0x53c   :  { %v887_v24 = vpack.c.bf16 %v859_v23, %v856_v20  ;;  %v1942_v20 = vld [vmem:[#allocation16] sm:$0xff]   ;;  %v1948_v23 = vld [vmem:[#allocation16 + $0x30] sm:$0xff]  }
 0x53e   :  { %1773 = vmatprep.subr.bf16.mxu0 %v887_v24 }
 0x53f   :  { %1774 = vmatpush3.bf16.msra.mxu0 %v887_v24 }
 0x540   :  { %v1771_v25 = vpop.f32.mrb[20].mxu1  ;;  %1775 = vmatprep.subr.bf16.mxu0 %v888_v22 }
 0x541   :  { %v872_v26 = vpop.f32.mrb[21].mxu1 }
 0x542   :  { %v1772_v27 = vpop.f32.mrb[22].mxu1 }
 0x543   :  { %v890_v28 = vpack.c.bf16 %v1772_v27, %v1771_v25  ;;  %v875_v29 = vpop.f32.mrb[23].mxu1  ;;  %1776 = vmatpush3.bf16.msra.mxu0 %v888_v22  ;;  %v1947_v22 = vld [vmem:[#allocation16 + $0x28] sm:$0xff]   ;;  %v1530_v25 = vld [vmem:[%s2583_s12] ss:$0 sm:$0xff] }
 0x544   :  { %v889_v31 = vpack.c.bf16 %v875_v29, %v872_v26 }
 0x546   :  { %1777 = vmatprep.subr.bf16.mxu0 %v889_v31 }
 0x547   :  { %1778 = vmatpush3.bf16.msra.mxu0 %v889_v31 }
 0x548   :  { %1779 = vmatprep.subr.bf16.mxu0 %v890_v28 }
 0x54b   :  { %1780 = vmatpush3.bf16.msra.mxu0 %v890_v28 }
 0x54c   :  { %1789 = vmatprep.subr.bf16.mxu0 %v1934_v30 }
 0x54e   :  { %1782 = vmatmul.mubr.msk.bf16.vlgmr.msra.gmra.mrb[16].mxu0 %vm668_vm0, %v2491_v44 }
 0x54f   :  { %1785 = vmatprep.mubr.msk.bf16.mxu0 %vm668_vm0, %v2493_v45  ;;  %1790 = vmatpush3.bf16.msra.mxu0 %v1934_v30 }
 0x550   :  { %1791 = vmatprep.subr.bf16.mxu0 %v1935_v32 }
 0x553   :  { %1792 = vmatpush3.bf16.msra.mxu0 %v1935_v32 }
 0x554   :  { %1793 = vmatprep.subr.bf16.mxu0 %v1936_v33 }
 0x556   :  { %1786 = vmatmul.mubr.msk.bf16.gmra.mrb[20].mxu0 %vm668_vm0, %v2499_v48 }
 0x557   :  { %1794 = vmatpush3.bf16.msra.mxu0 %v1936_v33 }
 0x558   :  { %1795 = vmatprep.subr.bf16.mxu0 %v1937_v34 }
 0x55b   :  { %1796 = vmatpush3.bf16.msra.mxu0 %v1937_v34 }
 0x55c   :  { %1797 = vmatprep.subr.bf16.mxu0 %v1938_v35 }
 0x55f   :  { %1798 = vmatpush3.bf16.msra.mxu0 %v1938_v35 }
 0x560   :  { %1799 = vmatprep.subr.bf16.mxu0 %v1939_v36 }
 0x563   :  { %1800 = vmatpush3.bf16.msra.mxu0 %v1939_v36 }
 0x564   :  { %1801 = vmatprep.subr.bf16.mxu0 %v1940_v37 }
 0x567   :  { %1802 = vmatpush3.bf16.msra.mxu0 %v1940_v37 }
 0x568   :  { %1803 = vmatprep.subr.bf16.mxu0 %v1941_v38 }
 0x56b   :  { %1804 = vmatpush3.bf16.msra.mxu0 %v1941_v38 }
 0x56c   :  { %1841 = vmatprep.subr.bf16.mxu0 %v2228_v19 }
 0x621   :  { %v1783_v40 = vpop.f32.mrb[16].mxu0 }
 0x622   :  { %v941_v41 = vadd.f32 %v1783_v40, %v1517_v39  ;;  %v932_v42 = vpop.f32.mrb[17].mxu0 }
 0x623   :  { %v933_v43 = vadd.f32 %v1517_v39, %v932_v42  ;;  %v1784_v46 = vpop.f32.mrb[18].mxu0 }
 0x624   :  { %v944_v47 = vadd.f32 %v1784_v46, %v1517_v39  ;;  %v935_v49 = vpop.f32.mrb[19].mxu0  ;;  %v965_v51 = vmax.f32 %v941_v41, 0.0 }
 0x625   :  { %v936_v50 = vadd.f32 %v1517_v39, %v935_v49  ;;  %v963_v53 = vmax.f32 %v933_v43, 0.0  ;;  %v1949_v49 = vld [vmem:[#allocation16 + $0x38] sm:$0xff]  }
 0x626   :  { %v966_v52 = vmax.f32 %v944_v47, 0.0  ;;  %v1180_v47 = vld [vmem:[#allocation5] sm:$0xf] }
 0x627   :  { %v964_v54 = vmax.f32 %v936_v50, 0.0  ;;  %v1950_v50 = vld [vmem:[#allocation17] sm:$0xff]  }
 0x628   :  { %v972_v55 = vpack.c.bf16 %v966_v52, %v965_v51  ;;  %v1951_v51 = vld [vmem:[#allocation17 + $0x8] sm:$0xff]   ;;  %v1952_v52 = vld [vmem:[#allocation17 + $0x10] sm:$0xff]  }
 0x629   :  { %v971_v56 = vpack.c.bf16 %v964_v54, %v963_v53  ;;  %v1787_v57 = vpop.f32.mrb[20].mxu0  ;;  %v1953_v53 = vld [vmem:[#allocation17 + $0x18] sm:$0xff]   ;;  %v1954_v54 = vld [vmem:[#allocation17 + $0x20] sm:$0xff]  }
 0x62a   :  { %v957_v58 = vadd.f32 %v1787_v57, %v1517_v39  ;;  %v948_v59 = vpop.f32.mrb[21].mxu0 }
 0x62b   :  { %v949_v60 = vadd.f32 %v1517_v39, %v948_v59  ;;  %v1788_v61 = vpop.f32.mrb[22].mxu0  ;;  %1805 = vmatprep.mubr.bf16.mxu0 %v971_v56 }
 0x62c   :  { %v960_v62 = vadd.f32 %v1788_v61, %v1517_v39  ;;  %v951_v63 = vpop.f32.mrb[23].mxu0  ;;  %1806 = vmatmul.mubr.bf16.vlgmr.msra.gmra.mrb[24].mxu0 %v972_v55  ;;  %v969_v1 = vmax.f32 %v957_v58, 0.0  ;;  %v1955_v55 = vld [vmem:[#allocation17 + $0x28] sm:$0xff]   ;;  %v1956_v61 = vld [vmem:[#allocation17 + $0x30] sm:$0xff]  }
 0x62d   :  { %v952_v0 = vadd.f32 %v1517_v39, %v951_v63  ;;  %v967_v3 = vmax.f32 %v949_v60, 0.0  ;;  %1842 = vmatpush3.bf16.msra.mxu0 %v1942_v20  ;;  %v1536_v63 = vld [vmem:[%s2585_s14] ss:$0 sm:$0xff]  ;;  %s2178_s14 = scalar_lea.vmem %s1461_s9, 128 }
 0x62e   :  { %v970_v2 = vmax.f32 %v960_v62, 0.0  ;;  %1843 = vmatprep.subr.bf16.mxu0 %v2228_v19  ;;  %v1957_v62 = vld [vmem:[#allocation17 + $0x38] sm:$0xff]   ;;  %p2179_p10 = scmp.ne.s32.totalorder %s1461_s9, %s2178_s14  ;;  %p2184_p12 = scmp.lt.s32.totalorder %s2178_s14, %s2178_s14 }
 0x62f   :  { %v968_v4 = vmax.f32 %v952_v0, 0.0 }
 0x630   :  { %v974_v5 = vpack.c.bf16 %v970_v2, %v969_v1  ;;  %p2185_p13 = por %p2184_p12, %p2183_p11 }
 0x631   :  { %v973_v6 = vpack.c.bf16 %v968_v4, %v967_v3 }
 0x632   :  { %p2186_p0 = pnand %p2185_p13, %p2179_p10 }
 0x633   :  { %1809 = vmatprep.mubr.bf16.mxu0 %v973_v6 }
 0x634   :  { %1810 = vmatmul.mubr.bf16.gmra.mrb[28].mxu0 %v974_v5 }
 0x635   :  { %1857 = vmatprep.mubr.msk.bf16.mxu0 %vm2229_vm1, %v2228_v19 }
 0x6ff   :  { %v1807_v7 = vpop.f32.mrb[24].mxu0 }
 0x700   :  { %v1073_v8 = vpop.f32.mrb[25].mxu0 }
 0x701   :  { %v1808_v9 = vpop.f32.mrb[26].mxu0 }
 0x702   :  { %v1105_v10 = vpack.c.bf16 %v1808_v9, %v1807_v7  ;;  %v1076_v11 = vpop.f32.mrb[27].mxu0  ;;  %v1545_v7 = vld [vmem:[%s2587_s16] ss:$0 sm:$0xff] }
 0x703   :  { %v1104_v12 = vpack.c.bf16 %v1076_v11, %v1073_v8 }
 0x705   :  { %1813 = vmatprep.subr.bf16.mxu1 %v1104_v12 }
 0x706   :  { %1814 = vmatpush3.bf16.msra.mxu1 %v1104_v12 }
 0x707   :  { %v1811_v13 = vpop.f32.mrb[28].mxu0  ;;  %1815 = vmatprep.subr.bf16.mxu1 %v1105_v10 }
 0x708   :  { %v1089_v14 = vpop.f32.mrb[29].mxu0 }
 0x709   :  { %v1812_v15 = vpop.f32.mrb[30].mxu0 }
 0x70a   :  { %v1107_v16 = vpack.c.bf16 %v1812_v15, %v1811_v13  ;;  %v1092_v17 = vpop.f32.mrb[31].mxu0  ;;  %1816 = vmatpush3.bf16.msra.mxu1 %v1105_v10 }
 0x70b   :  { %v1106_v18 = vpack.c.bf16 %v1092_v17, %v1089_v14 }
 0x70d   :  { %1817 = vmatprep.subr.bf16.mxu1 %v1106_v18 }
 0x70e   :  { %1818 = vmatpush3.bf16.msra.mxu1 %v1106_v18 }
 0x70f   :  { %1819 = vmatprep.subr.bf16.mxu1 %v1107_v16 }
 0x712   :  { %1820 = vmatpush3.bf16.msra.mxu1 %v1107_v16 }
 0x713   :  { %1829 = vmatprep.subr.bf16.mxu1 %v2228_v19 }
 0x715   :  { %1822 = vmatmul.mubr.msk.bf16.vlgmr.msra.gmra.mrb[24].mxu1 %vm668_vm0, %v2491_v44  ;;  %v1943_v44 = vld [vmem:[#allocation16 + $0x8] sm:$0xff]  }
 0x716   :  { %1825 = vmatprep.mubr.msk.bf16.mxu1 %vm668_vm0, %v2493_v45  ;;  %1844 = vmatpush3.bf16.msra.mxu0 %v1943_v44  ;;  %v1944_v45 = vld [vmem:[#allocation16 + $0x10] sm:$0xff]  }
 0x717   :  { %1845 = vmatprep.subr.bf16.mxu0 %v2228_v19 }
 0x71a   :  { %1846 = vmatpush3.bf16.msra.mxu0 %v1944_v45 }
 0x71b   :  { %1847 = vmatprep.subr.bf16.mxu0 %v2228_v19 }
 0x71d   :  { %1826 = vmatmul.mubr.msk.bf16.gmra.mrb[28].mxu1 %vm668_vm0, %v2499_v48  ;;  %v1945_v48 = vld [vmem:[#allocation16 + $0x18] sm:$0xff]  }
 0x71e   :  { %1837 = vmatprep.mubr.msk.bf16.mxu1 %vm2229_vm1, %v2228_v19  ;;  %1848 = vmatpush3.bf16.msra.mxu0 %v1945_v48 }
 0x71f   :  { %1849 = vmatprep.subr.bf16.mxu0 %v2228_v19 }
 0x722   :  { %1850 = vmatpush3.bf16.msra.mxu0 %v1946_v21 }
 0x723   :  { %1851 = vmatprep.subr.bf16.mxu0 %v2228_v19 }
 0x726   :  { %1852 = vmatpush3.bf16.msra.mxu0 %v1947_v22 }
 0x727   :  { %1853 = vmatprep.subr.bf16.mxu0 %v2228_v19 }
 0x72a   :  { %1854 = vmatpush3.bf16.msra.mxu0 %v1948_v23 }
 0x72b   :  { %1855 = vmatprep.subr.bf16.mxu0 %v2228_v19 }
 0x72e   :  { %1856 = vmatpush3.bf16.msra.mxu0 %v1949_v49 }
 0x7e8   :  { %v1823_v24 = vpop.f32.mrb[24].mxu1 }
 0x7e9   :  { %v1149_v26 = vpop.f32.mrb[25].mxu1  ;;  %v1158_v28 = vadd.f32 %v1823_v24, %v1530_v25 }
 0x7ea   :  { %v1824_v27 = vpop.f32.mrb[26].mxu1  ;;  %v1150_v30 = vadd.f32 %v1530_v25, %v1149_v26 }
 0x7eb   :  { %v1161_v29 = vadd.f32 %v1824_v27, %v1530_v25  ;;  %v1152_v31 = vpop.f32.mrb[27].mxu1 }
 0x7ec   :  { %v1153_v32 = vadd.f32 %v1530_v25, %v1152_v31 }
 0x7ed   :  { %v1182_v33 = vpack.c.bf16 %v1161_v29, %v1158_v28 }
 0x7ee   :  { %v1181_v34 = vpack.c.bf16 %v1153_v32, %v1150_v30 }
 0x7f0   :  { %v1827_v35 = vpop.f32.mrb[28].mxu1  ;;  %1830 = vmatpush3.bf16.msra.mxu1 %v1181_v34 }
 0x7f1   :  { %v1165_v36 = vpop.f32.mrb[29].mxu1  ;;  %1831 = vmatprep.subr.bf16.mxu1 %v2228_v19  ;;  %v1174_v38 = vadd.f32 %v1827_v35, %v1530_v25 }
 0x7f2   :  { %v1828_v37 = vpop.f32.mrb[30].mxu1  ;;  %v1166_v41 = vadd.f32 %v1530_v25, %v1165_v36 }
 0x7f3   :  { %v1177_v39 = vadd.f32 %v1828_v37, %v1530_v25  ;;  %v1168_v40 = vpop.f32.mrb[31].mxu1 }
 0x7f4   :  { %v1169_v42 = vadd.f32 %v1530_v25, %v1168_v40  ;;  %1832 = vmatpush3.bf16.msra.mxu1 %v1182_v33 }
 0x7f5   :  { %v1184_v43 = vpack.c.bf16 %v1177_v39, %v1174_v38  ;;  %1833 = vmatprep.subr.bf16.mxu1 %v2228_v19 }
 0x7f6   :  { %v1183_v46 = vpack.c.bf16 %v1169_v42, %v1166_v41 }
 0x7f8   :  { %1834 = vmatpush3.bf16.msra.mxu1 %v1183_v46 }
 0x7f9   :  { %1835 = vmatprep.subr.bf16.mxu1 %v2228_v19 }
 0x7fc   :  { %1836 = vmatpush3.bf16.msra.mxu1 %v1184_v43 }
 0x7fd   :  { %1861 = vmatprep.subr.bf16.mxu1 %v2228_v19 }
 0x7ff   :  { %1838 = vmatmul.mubr.msk.bf16.vlgmr.msra.gmra.mrb[32].mxu1 %vm668_vm0, %v1180_v47 }
 0x800   :  { %1877 = vmatprep.mubr.msk.bf16.mxu1 %vm2229_vm1, %v2228_v19  ;;  %1862 = vmatpush3.bf16.msra.mxu1 %v1950_v50 }
 0x801   :  { %1863 = vmatprep.subr.bf16.mxu1 %v2228_v19 }
 0x804   :  { %1864 = vmatpush3.bf16.msra.mxu1 %v1951_v51 }
 0x805   :  { %1865 = vmatprep.subr.bf16.mxu1 %v2228_v19 }
 0x808   :  { %1866 = vmatpush3.bf16.msra.mxu1 %v1952_v52 }
 0x809   :  { %1867 = vmatprep.subr.bf16.mxu1 %v2228_v19 }
 0x80c   :  { %1868 = vmatpush3.bf16.msra.mxu1 %v1953_v53 }
 0x80d   :  { %1869 = vmatprep.subr.bf16.mxu1 %v2228_v19 }
 0x810   :  { %1870 = vmatpush3.bf16.msra.mxu1 %v1954_v54 }
 0x811   :  { %1871 = vmatprep.subr.bf16.mxu1 %v2228_v19 }
 0x814   :  { %1872 = vmatpush3.bf16.msra.mxu1 %v1955_v55 }
 0x815   :  { %1873 = vmatprep.subr.bf16.mxu1 %v2228_v19 }
 0x818   :  { %1874 = vmatpush3.bf16.msra.mxu1 %v1956_v61 }
 0x819   :  { %1875 = vmatprep.subr.bf16.mxu1 %v2228_v19 }
 0x81c   :  { %1876 = vmatpush3.bf16.msra.mxu1 %v1957_v62 }
 0x8d2   :  { %v1222_v56 = vpop.f32.mrb[32].mxu1 }
 0x8d3   :  { %v1228_v57 = vpack.c.bf16 %v1222_v56, %v1222_v56  ;;  %v1839_v58 = vpop.f32.mrb[33].mxu1 }
 0x8d4   :  { %v1225_v59 = vpop.f32.mrb[34].mxu1 }
 0x8d5   :  { %v1840_v60 = vpop.f32.mrb[35].mxu1  ;;  %1858 = vmatmul.mubr.bf16.vlgmr.msra.gmra.mrb[32].mxu0 %v1228_v57 }
 0x9a8   :  { %v1334_v0 = vpop.f32.mrb[32].mxu0 }
 0x9a9   :  { %v1335_v1 = vadd.f32 %v1536_v63, %v1334_v0  ;;  %v1859_v2 = vpop.f32.mrb[33].mxu0 }
 0x9aa   :  { %v1337_v3 = vpop.f32.mrb[34].mxu0 }
 0x9ab   :  { %v1340_v4 = vmax.f32 %v1335_v1, 0.0  ;;  %v1860_v5 = vpop.f32.mrb[35].mxu0 }
 0x9ad   :  { %v1341_v6 = vpack.c.bf16 %v1340_v4, %v1340_v4 }
 0x9af   :  { %1878 = vmatmul.mubr.bf16.vlgmr.msra.gmra.mrb[36].mxu1 %v1341_v6 }
 0xa82   :  { %v1447_v8 = vpop.f32.mrb[36].mxu1 }
 0xa83   :  { %v1448_v9 = vadd.f32 %v1545_v7, %v1447_v8  ;;  %v1879_v10 = vpop.f32.mrb[37].mxu1 }
 0xa84   :  { %v1450_v11 = vpop.f32.mrb[38].mxu1 }
 0xa85   :  { %1453 = vst [vmem:[#allocation19] sm:$0xff] %v1448_v9  ;;  %v1880_v12 = vpop.f32.mrb[39].mxu1 }
 0xa86   :  { %2189 = shalt.err (!%p2186_p0)
}
 0xa87   :  { %s2190_s16 = scalar_lea.hbm %s2588_s17, 128 }
 0xa88   :  { %p2191_p1 = scmp.ne.s32.totalorder %s2588_s17, %s2190_s16  ;;  %p2194_p2 = scmp.lt.u32.totalorder %s2190_s16, %s2588_s17 }
 0xa8a   :  { %p2196_p3 = pnand %p2194_p2, %p2191_p1 }
 0xa8c   :  { %2199 = shalt.err (!%p2196_p3)
}
 0xa8d   :  { %1463 = dma.vmem_to_hbm [thread:$0]  %s1461_s9, 128, %s2588_s17, [#allocation4]  }
 0xa8e   :  { %2212 = dma.done.wait [#allocation4], 128  }
 0xa8f   :  { %2213 = vsyncadd [#allocation4], 4294967168 }
 0xa90   :  { %1467 = vsyncpa [#allocation3], 1 }
 0xa91   :  { %1468 = vsyncpa [#allocation6], 1 }
 0xa92   :  { %1469 = vsyncpa [#allocation9], 1 }
 0xa93   :  { %1470 = vsyncpa [#allocation12], 1 }
 0xa94   :  { %1471 = vsyncpa [#allocation15], 1 }
 0xa95   :  { %1472 = vsyncpa [#allocation18], 1 }
 0xa96   :  { %1473 = vsyncpa [#allocation4], 1 }

</bundles_post_ra>
